<compile_context>
chip_gen: v5e
topology: v5e:2x2
jax: 0.10.0
libtpu: 0.0.40
codegen_flags: <defaults>
</compile_context>

<pallas_src>
import jax
import jax.numpy as jnp
from jax.experimental import pallas as pl
from jax.experimental.pallas import tpu as pltpu

NEG_SLOPE = 0.01        # PyTorch nn.LeakyReLU() default negative_slope
NEG_FILL = -1e30        # "minus infinity" for padded class columns


def _round_up(x, m):
    return ((x + m - 1) // m) * m


def _leaky_relu(x):
    return jnp.where(x > 0, x, NEG_SLOPE * x)


def mlp_kernel(x_ref, w1_ref, b1_ref, w2_ref, b2_ref, w3_ref, b3_ref, o_ref):
    x = x_ref[...]                                                      # (TB, D_pad) bf16

    # Linear 1 + LeakyReLU   (Dropout -> identity at inference)
    h1 = jnp.dot(x, w1_ref[...], preferred_element_type=jnp.float32)   # (TB, 256) fp32
    h1 = _leaky_relu(h1 + b1_ref[...])

    # Linear 2 + LeakyReLU   (Dropout -> identity at inference)
    h2 = jnp.dot(h1.astype(jnp.bfloat16), w2_ref[...],
                 preferred_element_type=jnp.float32)                   # (TB, 128) fp32
    h2 = _leaky_relu(h2 + b2_ref[...])

    # Linear 3 (class dim padded to 128; padded bias = -1e30, padded w3 cols = 0)
    logits = jnp.dot(h2.astype(jnp.bfloat16), w3_ref[...],
                     preferred_element_type=jnp.float32) + b3_ref[...]  # (TB, 128)

    # LogSoftmax over the (lane-dense, 128-wide) class dim.
    # Padded columns hold ~-1e30 -> exp == 0, so they don't perturb the LSE.
    m = jnp.max(logits, axis=-1, keepdims=True)
    shifted = logits - m
    lse = jnp.log(jnp.sum(jnp.exp(shifted), axis=-1, keepdims=True))
    o_ref[...] = shifted - lse                                          # (TB, 128)


def label_pred_mnist(x, params):
    """x: (B, attackInput) float32.  params: (in, out) weights, (1, out) biases."""
    w1, b1, w2, b2, w3, b3 = (params["w1"], params["b1"], params["w2"],
                              params["b2"], params["w3"], params["b3"])
    B, D_in = x.shape
    C = w3.shape[1]

    # ---- lane-dense input padding (D_in -> multiple of 128, zero rows in w1) ----
    D_pad = _round_up(D_in, 128)
    w1p = jnp.zeros((D_pad, w1.shape[1]), jnp.float32).at[:D_in, :].set(w1)

    # ---- lane-dense class padding (C -> 128) ----
    C_pad = _round_up(C, 128)
    w3p = jnp.zeros((w3.shape[0], C_pad), jnp.float32).at[:, :C].set(w3)
    b3p = jnp.full((1, C_pad), NEG_FILL, jnp.float32).at[:, :C].set(b3)

    # ---- batch tiling (TB multiple of 16 for bf16 sublane packing) ----
    TB = min(512, _round_up(B, 16))
    B_pad = _round_up(B, TB)
    x_p = jnp.zeros((B_pad, D_pad), jnp.float32).at[:B, :D_in].set(x)

    # ---- bf16 MXU operands (fp32 accumulation inside the kernel) ----
    x_bf = x_p.astype(jnp.bfloat16)
    w1_bf = w1p.astype(jnp.bfloat16)
    w2_bf = w2.astype(jnp.bfloat16)
    w3_bf = w3p.astype(jnp.bfloat16)

    grid = (B_pad // TB,)

    def resident(arr):
        # Whole (tiny) array as one block with a constant index_map ->
        # stays resident in VMEM, DMA'd once for the whole grid.
        return pl.BlockSpec(arr.shape, lambda i: (0, 0))

    out = pl.pallas_call(
        mlp_kernel,
        out_shape=jax.ShapeDtypeStruct((B_pad, C_pad), jnp.float32),
        grid=grid,
        in_specs=[
            pl.BlockSpec((TB, D_pad), lambda i: (i, 0)),   # streamed x tile
            resident(w1_bf), resident(b1),
            resident(w2_bf), resident(b2),
            resident(w3_bf), resident(b3p),
        ],
        out_specs=pl.BlockSpec((TB, C_pad), lambda i: (i, 0)),
        compiler_params=pltpu.CompilerParams(
            dimension_semantics=("parallel",)),
    )(x_bf, w1_bf, b1, w2_bf, b2, w3_bf, b3p)

    return out[:B, :C]


label_pred_mnist_jit = jax.jit(label_pred_mnist)


def init_params(key, attack_input, num_classes):
    """PyTorch nn.Linear default init: U(-1/sqrt(fan_in), 1/sqrt(fan_in)).
    Weights stored as (in, out) = PyTorch weight transposed."""
    keys = jax.random.split(key, 6)

    def linear(kw, kb, fan_in, fan_out):
        bound = 1.0 / jnp.sqrt(fan_in)
        w = jax.random.uniform(kw, (fan_in, fan_out), jnp.float32, -bound, bound)
        b = jax.random.uniform(kb, (1, fan_out), jnp.float32, -bound, bound)
        return w, b

    w1, b1 = linear(keys[0], keys[1], attack_input, 256)
    w2, b2 = linear(keys[2], keys[3], 256, 128)
    w3, b3 = linear(keys[4], keys[5], 128, num_classes)
    return {"w1": w1, "b1": b1, "w2": w2, "b2": b2, "w3": w3, "b3": b3}


if __name__ == "__main__":
    key = jax.random.PRNGKey(0)
    k_x, k_p = jax.random.split(key)

    batch = 8
    attack_input = 32      # "attackInput" constructor arg
    num_classes = 10       # "numOfClasses" constructor arg (MNIST)

    x = jax.random.normal(k_x, (batch, attack_input), jnp.float32)
    params = init_params(k_p, attack_input, num_classes)

    out = label_pred_mnist_jit(x, params)
    out = jax.block_until_ready(out)

    # sanity: log-softmax rows should exp-sum to ~1 (bf16 matmul -> loose tol)
    row_sums = jnp.sum(jnp.exp(out), axis=1)
    assert out.shape == (batch, num_classes)
    assert bool(jnp.all(jnp.abs(row_sums - 1.0) < 1e-3))

    # reference check against plain-JAX fp32 forward (bf16 MXU -> loose tol)
    def ref(xv, p):
        a1 = xv @ p["w1"] + p["b1"]
        h1 = jnp.where(a1 > 0, a1, NEG_SLOPE * a1)
        a2 = h1 @ p["w2"] + p["b2"]
        h2 = jnp.where(a2 > 0, a2, NEG_SLOPE * a2)
        lg = h2 @ p["w3"] + p["b3"]
        return jax.nn.log_softmax(lg, axis=1)

    assert bool(jnp.all(jnp.abs(out - ref(x, params)) < 5e-2))

    # TODO(synk): Dropout(0.5) is a no-op here (eval-mode semantics); training-mode
    # stochastic masking would use pltpu.prng_seed / pltpu.prng_random_bits.
    print("KERNEL_OK")
</pallas_src>

<mosaic_0001>
module attributes {stable_mosaic.version = 11 : i64} {
  func.func @mlp_kernel(%arg0: i32, %arg1: memref<16x128xbf16, #tpu.memory_space<vmem>>, %arg2: memref<128x256xbf16, #tpu.memory_space<vmem>>, %arg3: memref<1x256xf32, #tpu.memory_space<vmem>>, %arg4: memref<256x128xbf16, #tpu.memory_space<vmem>>, %arg5: memref<1x128xf32, #tpu.memory_space<vmem>>, %arg6: memref<128x128xbf16, #tpu.memory_space<vmem>>, %arg7: memref<1x128xf32, #tpu.memory_space<vmem>>, %arg8: memref<16x128xf32, #tpu.memory_space<vmem>>) attributes {dimension_semantics = [#tpu.dimension_semantics<parallel>], iteration_bounds = array<i64: 1>, scalar_prefetch = 0 : i64, scratch_operands = 0 : i64, tpu.core_type = #tpu.core_type<tc>, window_params = [{transform_indices = @transform_0, window_bounds = array<i64: 16, 128>}, {pipeline_mode = #tpu.pipeline_mode<synchronous>, transform_indices = @transform_1, window_bounds = array<i64: 128, 256>}, {pipeline_mode = #tpu.pipeline_mode<synchronous>, transform_indices = @transform_2, window_bounds = array<i64: 1, 256>}, {pipeline_mode = #tpu.pipeline_mode<synchronous>, transform_indices = @transform_3, window_bounds = array<i64: 256, 128>}, {pipeline_mode = #tpu.pipeline_mode<synchronous>, transform_indices = @transform_4, window_bounds = array<i64: 1, 128>}, {pipeline_mode = #tpu.pipeline_mode<synchronous>, transform_indices = @transform_5, window_bounds = array<i64: 128, 128>}, {pipeline_mode = #tpu.pipeline_mode<synchronous>, transform_indices = @transform_6, window_bounds = array<i64: 1, 128>}, {transform_indices = @transform_7, window_bounds = array<i64: 16, 128>}]} {
    %c0 = arith.constant 0 : index
    %c0_0 = arith.constant 0 : index
    %0 = vector.load %arg1[%c0, %c0_0] : memref<16x128xbf16, #tpu.memory_space<vmem>>, vector<16x128xbf16>
    %c0_1 = arith.constant 0 : index
    %c0_2 = arith.constant 0 : index
    %1 = vector.load %arg2[%c0_1, %c0_2] : memref<128x256xbf16, #tpu.memory_space<vmem>>, vector<128x256xbf16>
    %cst = arith.constant dense<0.000000e+00> : vector<16x256xf32>
    %2 = tpu.matmul %0, %1, %cst {dimension_numbers = #tpu.dot_dimension_numbers<[1], [0], [0], [1], [0, 0, 1, 1], [], []>} : vector<16x128xbf16>, vector<128x256xbf16>, vector<16x256xf32> -> vector<16x256xf32>
    %c0_3 = arith.constant 0 : index
    %c0_4 = arith.constant 0 : index
    %3 = vector.load %arg3[%c0_3, %c0_4] : memref<1x256xf32, #tpu.memory_space<vmem>>, vector<1x256xf32>
    %4 = vector.broadcast %3 : vector<1x256xf32> to vector<16x256xf32>
    %5 = arith.addf %2, %4 : vector<16x256xf32>
    %cst_5 = arith.constant 0.000000e+00 : f32
    %6 = vector.broadcast %cst_5 : f32 to vector<16x256xf32>
    %7 = arith.cmpf ogt, %5, %6 : vector<16x256xf32>
    %cst_6 = arith.constant 0.00999999977 : f32
    %8 = vector.broadcast %cst_6 : f32 to vector<16x256xf32>
    %9 = arith.mulf %8, %5 : vector<16x256xf32>
    %10 = arith.select %7, %5, %9 : vector<16x256xi1>, vector<16x256xf32>
    %11 = arith.truncf %10 : vector<16x256xf32> to vector<16x256xbf16>
    %c0_7 = arith.constant 0 : index
    %c0_8 = arith.constant 0 : index
    %12 = vector.load %arg4[%c0_7, %c0_8] : memref<256x128xbf16, #tpu.memory_space<vmem>>, vector<256x128xbf16>
    %cst_9 = arith.constant dense<0.000000e+00> : vector<16x128xf32>
    %13 = tpu.matmul %11, %12, %cst_9 {dimension_numbers = #tpu.dot_dimension_numbers<[1], [0], [0], [1], [0, 0, 1, 1], [], []>} : vector<16x256xbf16>, vector<256x128xbf16>, vector<16x128xf32> -> vector<16x128xf32>
    %c0_10 = arith.constant 0 : index
    %c0_11 = arith.constant 0 : index
    %14 = vector.load %arg5[%c0_10, %c0_11] : memref<1x128xf32, #tpu.memory_space<vmem>>, vector<1x128xf32>
    %15 = vector.broadcast %14 : vector<1x128xf32> to vector<16x128xf32>
    %16 = arith.addf %13, %15 : vector<16x128xf32>
    %cst_12 = arith.constant 0.000000e+00 : f32
    %17 = vector.broadcast %cst_12 : f32 to vector<16x128xf32>
    %18 = arith.cmpf ogt, %16, %17 : vector<16x128xf32>
    %cst_13 = arith.constant 0.00999999977 : f32
    %19 = vector.broadcast %cst_13 : f32 to vector<16x128xf32>
    %20 = arith.mulf %19, %16 : vector<16x128xf32>
    %21 = arith.select %18, %16, %20 : vector<16x128xi1>, vector<16x128xf32>
    %22 = arith.truncf %21 : vector<16x128xf32> to vector<16x128xbf16>
    %c0_14 = arith.constant 0 : index
    %c0_15 = arith.constant 0 : index
    %23 = vector.load %arg6[%c0_14, %c0_15] : memref<128x128xbf16, #tpu.memory_space<vmem>>, vector<128x128xbf16>
    %cst_16 = arith.constant dense<0.000000e+00> : vector<16x128xf32>
    %24 = tpu.matmul %22, %23, %cst_16 {dimension_numbers = #tpu.dot_dimension_numbers<[1], [0], [0], [1], [0, 0, 1, 1], [], []>} : vector<16x128xbf16>, vector<128x128xbf16>, vector<16x128xf32> -> vector<16x128xf32>
    %c0_17 = arith.constant 0 : index
    %c0_18 = arith.constant 0 : index
    %25 = vector.load %arg7[%c0_17, %c0_18] : memref<1x128xf32, #tpu.memory_space<vmem>>, vector<1x128xf32>
    %26 = vector.broadcast %25 : vector<1x128xf32> to vector<16x128xf32>
    %27 = arith.addf %24, %26 : vector<16x128xf32>
    %cst_19 = arith.constant dense<0xFF800000> : vector<16xf32>
    %28 = vector.multi_reduction <maximumf>, %27, %cst_19 [1] : vector<16x128xf32> to vector<16xf32>
    %29 = vector.shape_cast %28 : vector<16xf32> to vector<16x1xf32>
    %30 = vector.broadcast %29 : vector<16x1xf32> to vector<16x128xf32>
    %31 = arith.subf %27, %30 : vector<16x128xf32>
    %32 = math.exp %31 : vector<16x128xf32>
    %cst_20 = arith.constant dense<0.000000e+00> : vector<16xf32>
    %33 = vector.multi_reduction <add>, %32, %cst_20 [1] : vector<16x128xf32> to vector<16xf32>
    %34 = vector.shape_cast %33 : vector<16xf32> to vector<16x1xf32>
    %35 = math.log %34 : vector<16x1xf32>
    %36 = vector.broadcast %35 : vector<16x1xf32> to vector<16x128xf32>
    %37 = arith.subf %31, %36 : vector<16x128xf32>
    %c0_21 = arith.constant 0 : index
    %c0_22 = arith.constant 0 : index
    %38 = vector.load %arg8[%c0_21, %c0_22] : memref<16x128xf32, #tpu.memory_space<vmem>>, vector<16x128xf32>
    tpu.vector_store %arg8[%c0_21, %c0_22], %37 {strides = array<i32>} : memref<16x128xf32, #tpu.memory_space<vmem>>, vector<16x128xf32>,
    return
  }
  func.func @transform_0(%arg0: i32) -> (i32, i32) {
    %c0_i32 = arith.constant 0 : i32
    %c0_i32_0 = arith.constant 0 : i32
    return %arg0, %c0_i32 : i32, i32
  }
  func.func @transform_1(%arg0: i32) -> (i32, i32) {
    %c0_i32 = arith.constant 0 : i32
    %c0_i32_0 = arith.constant 0 : i32
    %c0_i32_1 = arith.constant 0 : i32
    return %c0_i32, %c0_i32_0 : i32, i32
  }
  func.func @transform_2(%arg0: i32) -> (i32, i32) {
    %c0_i32 = arith.constant 0 : i32
    %c0_i32_0 = arith.constant 0 : i32
    %c0_i32_1 = arith.constant 0 : i32
    return %c0_i32, %c0_i32_0 : i32, i32
  }
  func.func @transform_3(%arg0: i32) -> (i32, i32) {
    %c0_i32 = arith.constant 0 : i32
    %c0_i32_0 = arith.constant 0 : i32
    %c0_i32_1 = arith.constant 0 : i32
    return %c0_i32, %c0_i32_0 : i32, i32
  }
  func.func @transform_4(%arg0: i32) -> (i32, i32) {
    %c0_i32 = arith.constant 0 : i32
    %c0_i32_0 = arith.constant 0 : i32
    %c0_i32_1 = arith.constant 0 : i32
    return %c0_i32, %c0_i32_0 : i32, i32
  }
  func.func @transform_5(%arg0: i32) -> (i32, i32) {
    %c0_i32 = arith.constant 0 : i32
    %c0_i32_0 = arith.constant 0 : i32
    %c0_i32_1 = arith.constant 0 : i32
    return %c0_i32, %c0_i32_0 : i32, i32
  }
  func.func @transform_6(%arg0: i32) -> (i32, i32) {
    %c0_i32 = arith.constant 0 : i32
    %c0_i32_0 = arith.constant 0 : i32
    %c0_i32_1 = arith.constant 0 : i32
    return %c0_i32, %c0_i32_0 : i32, i32
  }
  func.func @transform_7(%arg0: i32) -> (i32, i32) {
    %c0_i32 = arith.constant 0 : i32
    %c0_i32_0 = arith.constant 0 : i32
    return %arg0, %c0_i32 : i32, i32
  }
}

</mosaic_0001>

<bundles_post_ra>
// kernel: label_pred_mnist.1
= control target key start
LH: loop header
LB: loop body
LE: loop exit
PB: predicated region body
PF: predicated region fallthrough
CT: control target
= control target key end

     0   :  { %s894_s1 = inlined_call_operand.vmem [shape: bf16[128,256], index: 1, kind: input, shape index: {}]   ;;  %s895_s3 = inlined_call_operand.vmem [shape: bf16[256,128], index: 3, kind: input, shape index: {}]   ;;  %s896_s0 = inlined_call_operand.vmem [shape: bf16[16,128], index: 0, kind: input, shape index: {}]   ;;  %s897_s4 = inlined_call_operand.vmem [shape: f32[1,128], index: 4, kind: input, shape index: {}]   ;;  %s898_s5 = inlined_call_operand.vmem [shape: bf16[128,128], index: 5, kind: input, shape index: {}]   ;;  %s899_s2 = inlined_call_operand.vmem [shape: f32[1,256], index: 2, kind: input, shape index: {}]   ;;  %s900_s6 = inlined_call_operand.vmem [shape: f32[1,128], index: 6, kind: input, shape index: {}]   ;;  %s901_s7 = inlined_call_operand.vmem [shape: f32[16,128], index: 7, kind: output, shape index: {}]  }
   0x1   :  { %v515_v0 = vld [vmem:[%s894_s1 + $0x70] sm:$0xf]  ;;  %v633_v1 = vld [vmem:[%s894_s1 + $0x74] sm:$0xf0]  ;;  %v632_v2 = vld [vmem:[%s894_s1 + $0x74] sm:$0xf] }
   0x2   :  { %v516_v3 = vor.u32 %v633_v1, %v515_v0  ;;  %v517_v4 = vld [vmem:[%s894_s1 + $0x78] sm:$0xf0]  ;;  %v507_v5 = vld [vmem:[%s894_s1 + $0x60] sm:$0xf]  ;;  %v631_v6 = vld [vmem:[%s894_s1 + $0x64] sm:$0xf0] }
   0x3   :  { %v520_v7 = vor.u32 %v632_v2, %v517_v4  ;;  %v630_v8 = vld [vmem:[%s894_s1 + $0x64] sm:$0xf]  ;;  %v509_v9 = vld [vmem:[%s894_s1 + $0x68] sm:$0xf0]  ;;  %v508_v10 = vor.u32 %v631_v6, %v507_v5  ;;  %v499_v12 = vld [vmem:[%s894_s1 + $0x50] sm:$0xf] }
   0x4   :  { %136 = vmatpush.bf16.msra.mxu0 %v516_v3  ;;  %v512_v11 = vor.u32 %v630_v8, %v509_v9  ;;  %v629_v13 = vld [vmem:[%s894_s1 + $0x54] sm:$0xf0]  ;;  %v628_v14 = vld [vmem:[%s894_s1 + $0x54] sm:$0xf]  ;;  %v501_v15 = vld [vmem:[%s894_s1 + $0x58] sm:$0xf0] }
   0x5   :  { %150 = vmatpush.bf16.msra.mxu1 %v520_v7  ;;  %v500_v16 = vor.u32 %v629_v13, %v499_v12  ;;  %v504_v17 = vor.u32 %v628_v14, %v501_v15  ;;  %v491_v18 = vld [vmem:[%s894_s1 + $0x40] sm:$0xf]  ;;  %v627_v19 = vld [vmem:[%s894_s1 + $0x44] sm:$0xf0]  ;;  %v626_v20 = vld [vmem:[%s894_s1 + $0x44] sm:$0xf] }
   0x6   :  { %v493_v21 = vld [vmem:[%s894_s1 + $0x48] sm:$0xf0]  ;;  %v492_v22 = vor.u32 %v627_v19, %v491_v18  ;;  %v641_v23 = vld [vmem:[%s895_s3 + $0x38] sm:$0xff]  ;;  %v483_v26 = vld [vmem:[%s894_s1 + $0x30] sm:$0xf] }
   0x7   :  { %v649_v24 = vld [vmem:[%s895_s3 + $0x78] sm:$0xff]  ;;  %v496_v25 = vor.u32 %v626_v20, %v493_v21  ;;  %v624_v28 = vld [vmem:[%s894_s1 + $0x34] sm:$0xf]  ;;  %310 = vmatpush.bf16.msra.mxu2 %v641_v23  ;;  %v475_v34 = vld [vmem:[%s894_s1 + $0x20] sm:$0xf] }
   0x8   :  { %137 = vmatpush.bf16.msra.mxu0 %v508_v10  ;;  %v625_v27 = vld [vmem:[%s894_s1 + $0x34] sm:$0xf0]  ;;  %v485_v29 = vld [vmem:[%s894_s1 + $0x38] sm:$0xf0]  ;;  %324 = vmatpush.bf16.msra.mxu3 %v649_v24  ;;  %v640_v30 = vld [vmem:[%s895_s3 + $0x30] sm:$0xff] }
   0x9   :  { %151 = vmatpush.bf16.msra.mxu1 %v512_v11  ;;  %v648_v31 = vld [vmem:[%s895_s3 + $0x70] sm:$0xff]  ;;  %v484_v32 = vor.u32 %v625_v27, %v483_v26  ;;  %v488_v33 = vor.u32 %v624_v28, %v485_v29  ;;  %v623_v35 = vld [vmem:[%s894_s1 + $0x24] sm:$0xf0]  ;;  %v622_v36 = vld [vmem:[%s894_s1 + $0x24] sm:$0xf] }
   0xa   :  { %v477_v37 = vld [vmem:[%s894_s1 + $0x28] sm:$0xf0]  ;;  %v476_v40 = vor.u32 %v623_v35, %v475_v34  ;;  %v467_v42 = vld [vmem:[%s894_s1 + $0x10] sm:$0xf]  ;;  %v621_v43 = vld [vmem:[%s894_s1 + $0x14] sm:$0xf0] }
   0xb   :  { %311 = vmatpush.bf16.msra.mxu2 %v640_v30  ;;  %v639_v38 = vld [vmem:[%s895_s3 + $0x28] sm:$0xff]  ;;  %v480_v41 = vor.u32 %v622_v36, %v477_v37  ;;  %v620_v44 = vld [vmem:[%s894_s1 + $0x14] sm:$0xf]  ;;  %v469_v45 = vld [vmem:[%s894_s1 + $0x18] sm:$0xf0]  ;;  %v468_v48 = vor.u32 %v621_v43, %v467_v42 }
   0xc   :  { %138 = vmatpush.bf16.msra.mxu0 %v500_v16  ;;  %325 = vmatpush.bf16.msra.mxu3 %v648_v31  ;;  %v647_v39 = vld [vmem:[%s895_s3 + $0x68] sm:$0xff]  ;;  %v638_v46 = vld [vmem:[%s895_s3 + $0x20] sm:$0xff]  ;;  %v472_v49 = vor.u32 %v620_v44, %v469_v45  ;;  %v637_v57 = vld [vmem:[%s895_s3 + $0x18] sm:$0xff] }
   0xd   :  { %152 = vmatpush.bf16.msra.mxu1 %v504_v17  ;;  %v646_v47 = vld [vmem:[%s895_s3 + $0x60] sm:$0xff]  ;;  %v619_v51 = vld [vmem:[%s894_s1 + $0x4] sm:$0xf0]  ;;  %v461_v53 = vld [vmem:[%s894_s1 + $0x8] sm:$0xf0] }
   0xe   :  { %v459_v50 = vld [vmem:[%s894_s1] sm:$0xf]  ;;  %v618_v52 = vld [vmem:[%s894_s1 + $0x4] sm:$0xf]  ;;  %v645_v58 = vld [vmem:[%s895_s3 + $0x58] sm:$0xff] }
   0xf   :  { %312 = vmatpush.bf16.msra.mxu2 %v639_v38  ;;  %v460_v54 = vor.u32 %v619_v51, %v459_v50  ;;  %v464_v55 = vor.u32 %v618_v52, %v461_v53  ;;  %v617_v56 = vld [vmem:[%s896_s0] sm:$0xff]  ;;  %v636_v59 = vld [vmem:[%s895_s3 + $0x10] sm:$0xff]  ;;  %v635_v61 = vld [vmem:[%s895_s3 + $0x8] sm:$0xff] }
  0x10   :  { %139 = vmatpush.bf16.msra.mxu0 %v492_v22  ;;  %326 = vmatpush.bf16.msra.mxu3 %v647_v39  ;;  %v644_v60 = vld [vmem:[%s895_s3 + $0x50] sm:$0xff]  ;;  %v643_v62 = vld [vmem:[%s895_s3 + $0x48] sm:$0xff]  ;;  %v634_v63 = vld [vmem:[%s895_s3] sm:$0xff] }
  0x11   :  { %153 = vmatpush.bf16.msra.mxu1 %v496_v25  ;;  %v642_v0 = vld [vmem:[%s895_s3 + $0x40] sm:$0xff]  ;;  %v657_v1 = vld [vmem:[%s898_s5 + $0x38] sm:$0xff]  ;;  %v656_v2 = vld [vmem:[%s898_s5 + $0x30] sm:$0xff] }
  0x12   :  { %v655_v3 = vld [vmem:[%s898_s5 + $0x28] sm:$0xff]  ;;  %v654_v4 = vld [vmem:[%s898_s5 + $0x20] sm:$0xff]  ;;  %v653_v26 = vld [vmem:[%s898_s5 + $0x18] sm:$0xff] }
  0x13   :  { %313 = vmatpush.bf16.msra.mxu2 %v638_v46  ;;  %v44_v5 = vld [vmem:[%s899_s2] sm:$0x3]  ;;  %v652_v27 = vld [vmem:[%s898_s5 + $0x10] sm:$0xff]  ;;  %v651_v28 = vld [vmem:[%s898_s5 + $0x8] sm:$0xff] }
  0x14   :  { %140 = vmatpush.bf16.msra.mxu0 %v484_v32  ;;  %327 = vmatpush.bf16.msra.mxu3 %v646_v47  ;;  %v46_v7 = vperm.slane %v44_v5, 0  ;;  %v47_v9 = vperm.slane %v44_v5, 1  ;;  %v650_v29 = vld [vmem:[%s898_s5] sm:$0xff] }
  0x15   :  { %154 = vmatpush.bf16.msra.mxu1 %v488_v33  ;;  %v658_v30 = vld [vmem:[%s897_s4] ss:$0 sm:$0xff] }
  0x16   :  { %v659_v44 = vld [vmem:[%s900_s6] ss:$0 sm:$0xff] }
  0x17   :  { %314 = vmatpush.bf16.msra.mxu2 %v637_v57 }
  0x18   :  { %141 = vmatpush.bf16.msra.mxu0 %v476_v40  ;;  %328 = vmatpush.bf16.msra.mxu3 %v645_v58 }
  0x19   :  { %155 = vmatpush.bf16.msra.mxu1 %v480_v41 }
  0x1b   :  { %315 = vmatpush.bf16.msra.mxu2 %v636_v59 }
  0x1c   :  { %142 = vmatpush.bf16.msra.mxu0 %v468_v48  ;;  %329 = vmatpush.bf16.msra.mxu3 %v644_v60 }
  0x1d   :  { %156 = vmatpush.bf16.msra.mxu1 %v472_v49 }
  0x1f   :  { %316 = vmatpush.bf16.msra.mxu2 %v635_v61 }
  0x20   :  { %143 = vmatpush.bf16.msra.mxu0 %v460_v54  ;;  %330 = vmatpush.bf16.msra.mxu3 %v643_v62 }
  0x21   :  { %157 = vmatpush.bf16.msra.mxu1 %v464_v55 }
  0x23   :  { %144 = vmatmul.bf16.vlgmr.msra.gmra.mxu0 %v617_v56  ;;  %317 = vmatpush.bf16.msra.mxu2 %v634_v63 }
  0x24   :  { %158 = vmatmul.bf16.vlgmr.msra.gmra.mxu1 %v617_v56  ;;  %331 = vmatpush.bf16.msra.mxu3 %v642_v0 }
  0x25   :  { %413 = vmatpush.bf16.msrb.mxu0 %v657_v1 }
  0x29   :  { %414 = vmatpush.bf16.msrb.mxu0 %v656_v2 }
  0x2d   :  { %415 = vmatpush.bf16.msrb.mxu0 %v655_v3 }
  0x31   :  { %416 = vmatpush.bf16.msrb.mxu0 %v654_v4 }
  0x35   :  { %417 = vmatpush.bf16.msrb.mxu0 %v653_v26 }
  0x39   :  { %418 = vmatpush.bf16.msrb.mxu0 %v652_v27 }
  0x3d   :  { %419 = vmatpush.bf16.msrb.mxu0 %v651_v28 }
  0x41   :  { %420 = vmatpush.bf16.msrb.mxu0 %v650_v29 }
  0xa0   :  { %v145_v6 = vpop.f32.mrf.mxu0 }
  0xa1   :  { %v159_v8 = vpop.f32.mrf.mxu1  ;;  %v146_v10 = vadd.f32 %v145_v6, %v46_v7 }
  0xa2   :  { %v160_v11 = vadd.f32 %v159_v8, %v47_v9 }
  0xa3   :  { %v168_v13 = vmul.f32 0.01, %v146_v10  ;;  %vm164_vm0 = vcmp.gt.f32.partialorder %v146_v10, 0.0 }
  0xa4   :  { %v169_v16 = vmul.f32 0.01, %v160_v11  ;;  %vm165_vm2 = vcmp.gt.f32.partialorder %v160_v11, 0.0 }
  0xa5   :  { %v172_v20 = vsel %vm164_vm0, %v146_v10, %v168_v13 }
  0xa6   :  { %v173_v23 = vsel %vm165_vm2, %v160_v11, %v169_v16 }
  0xa8   :  { %v147_v12 = vpop.f32.mrf.mxu0 }
  0xa9   :  { %v148_v14 = vadd.f32 %v147_v12, %v46_v7  ;;  %v161_v15 = vpop.f32.mrf.mxu1 }
  0xaa   :  { %v162_v17 = vadd.f32 %v161_v15, %v47_v9 }
  0xab   :  { %v170_v18 = vmul.f32 0.01, %v148_v14  ;;  %vm166_vm1 = vcmp.gt.f32.partialorder %v148_v14, 0.0 }
  0xac   :  { %v171_v19 = vmul.f32 0.01, %v162_v17  ;;  %vm167_vm3 = vcmp.gt.f32.partialorder %v162_v17, 0.0 }
  0xad   :  { %v174_v21 = vsel %vm166_vm1, %v148_v14, %v170_v18 }
  0xae   :  { %v176_v22 = vpack.c.bf16 %v174_v21, %v172_v20  ;;  %v175_v24 = vsel %vm167_vm3, %v162_v17, %v171_v19 }
  0xaf   :  { %v177_v25 = vpack.c.bf16 %v175_v24, %v173_v23 }
  0xb0   :  { %318 = vmatmul.bf16.vlgmr.msra.gmra.mxu2 %v176_v22 }
  0xb1   :  { %332 = vmatmul.bf16.vlgmr.msra.gmra.mxu3 %v177_v25 }
 0x133   :  { %v319_v31 = vpop.f32.mrf.mxu2 }
 0x134   :  { %v333_v32 = vpop.f32.mrf.mxu3  ;;  %v320_v33 = vadd.f32 %v658_v30, %v319_v31 }
 0x136   :  { %v334_v34 = vadd.f32 %v333_v32, %v320_v33 }
 0x138   :  { %v340_v38 = vmul.f32 0.01, %v334_v34  ;;  %vm338_vm4 = vcmp.gt.f32.partialorder %v334_v34, 0.0 }
 0x13a   :  { %v342_v41 = vsel %vm338_vm4, %v334_v34, %v340_v38 }
 0x13b   :  { %v321_v35 = vpop.f32.mrf.mxu2 }
 0x13c   :  { %v322_v36 = vadd.f32 %v658_v30, %v321_v35  ;;  %v335_v37 = vpop.f32.mrf.mxu3 }
 0x13e   :  { %v336_v39 = vadd.f32 %v335_v37, %v322_v36 }
 0x140   :  { %vm339_vm5 = vcmp.gt.f32.partialorder %v336_v39, 0.0  ;;  %v341_v40 = vmul.f32 0.01, %v336_v39 }
 0x142   :  { %v343_v42 = vsel %vm339_vm5, %v336_v39, %v341_v40 }
 0x143   :  { %v344_v43 = vpack.c.bf16 %v343_v42, %v342_v41 }
 0x145   :  { %421 = vmatmul.bf16.vlgmr.msrb.gmra.mxu0 %v344_v43 }
 0x1c2   :  { %v422_v45 = vpop.f32.mrf.mxu0 }
 0x1c3   :  { %v423_v46 = vadd.f32 %v659_v44, %v422_v45 }
 0x1c5   :  { %427 = vmax.xlane.f32.xlu0 %v423_v46 }
 0x1ca   :  { %v424_v47 = vpop.f32.mrf.mxu0 }
 0x1cb   :  { %v425_v48 = vadd.f32 %v659_v44, %v424_v47 }
 0x1cd   :  { %429 = vmax.xlane.f32.xlu0 %v425_v48 }
 0x238   :  { %v428_v49 = vpop.xlane.xlu0 %427 }
 0x239   :  { %v431_v50 = vsub.f32 %v423_v46, %v428_v49 }
 0x23b   :  { %v433_v51 = vmul.f32 1.442695, %v431_v50 }
 0x23d   :  { %660 = vpow2.f32 %v433_v51 }
 0x240   :  { %v430_v52 = vpop.xlane.xlu0 %429 }
 0x241   :  { %v432_v53 = vsub.f32 %v425_v48, %v430_v52 }
 0x243   :  { %v661_v54 = vpop.eup %660  ;;  %v435_v55 = vmul.f32 1.442695, %v432_v53 }
 0x244   :  { %437 = vadd.xlane.f32.xlu1 %v661_v54 }
 0x245   :  { %662 = vpow2.f32 %v435_v55 }
 0x24b   :  { %v663_v56 = vpop.eup %662 }
 0x24c   :  { %439 = vadd.xlane.f32.xlu1 %v663_v56 }
 0x2b7   :  { %v438_v57 = vpop.xlane.xlu1 %437 }
 0x2b8   :  { %664 = vlog2.f32 %v438_v57 }
 0x2be   :  { %v665_v58 = vpop.eup %664 }
 0x2bf   :  { %v442_v59 = vmul.f32 0.6931472, %v665_v58  ;;  %v440_v60 = vpop.xlane.xlu1 %439 }
 0x2c0   :  { %666 = vlog2.f32 %v440_v60 }
 0x2c1   :  { %v445_v61 = vsub.f32 %v431_v50, %v442_v59 }
 0x2c3   :  { %447 = vst [vmem:[%s901_s7] sm:$0xff] %v445_v61 }
 0x2c6   :  { %v667_v62 = vpop.eup %666 }
 0x2c7   :  { %v444_v63 = vmul.f32 0.6931472, %v667_v62 }
 0x2c9   :  { %v446_v0 = vsub.f32 %v432_v53, %v444_v63 }
 0x2cb   :  { %448 = vst [vmem:[%s901_s7 + $0x8] sm:$0xff] %v446_v0 }

</bundles_post_ra>
